<compile_context>
chip_gen: v5e
topology: v5e:2x2
jax: 0.10.0
libtpu: 0.0.40
codegen_flags: <defaults>
</compile_context>

<pallas_src>
import functools

import jax
import jax.numpy as jnp
from jax.experimental import pallas as pl
from jax.experimental.pallas import tpu as pltpu

_MIB = 1024 * 1024


def _round_up(a: int, b: int) -> int:
    return (a + b - 1) // b * b


def _vmem_capacity_bytes() -> int:
    """Physical VMEM per TensorCore (64 MiB v7x, 128 MiB v4/v5/v6)."""
    try:
        info = pltpu.get_tpu_info()
        for attr in ("vmem_capacity_bytes", "vmem_size_bytes", "vmem_bytes"):
            v = getattr(info, attr, None)
            if v:
                return int(v)
    except Exception:
        pass
    try:
        kind = jax.devices()[0].device_kind.lower()
        if any(tag in kind for tag in ("v4", "v5", "v6")):
            return 128 * _MIB
    except Exception:
        pass
    return 64 * _MIB  # conservative (v7x-sized) default


# ----------------------------------------------------------------------------
# Pallas kernel: (TM, K) patch tile  x  resident (K, TN) weight  + bias
# ----------------------------------------------------------------------------
def _patch_embed_kernel(x_ref, w_ref, b_ref, o_ref):
    # x_ref: (TM, K_pad)  streamed patch tile (bf16)
    # w_ref: (K_pad, TN)  projection weight (VMEM-resident / reused)
    # b_ref: (1, TN)      f32 bias
    # o_ref: (TM, TN)     output tile
    acc = jnp.dot(x_ref[...], w_ref[...], preferred_element_type=jnp.float32)
    o_ref[...] = (acc + b_ref[...]).astype(o_ref.dtype)


def _patch_embed_matmul(patches, weight, bias, *, out_dtype, tm_max=None):
    """patches: (M, K), weight: (K, E), bias: (E,) -> (M, E) in out_dtype."""
    M, K = patches.shape
    Kw, E = weight.shape
    assert Kw == K

    p_it = patches.dtype.itemsize
    w_it = weight.dtype.itemsize
    o_it = jnp.dtype(out_dtype).itemsize

    cap = _vmem_capacity_bytes()
    budget = min(cap - 12 * _MIB, 100 * _MIB)       # headroom for Mosaic scratch
    if tm_max is None:
        tm_max = 2048 if cap >= 96 * _MIB else 1024  # 128 MiB parts vs v7x

    # --- K padding: lane-align; bump to the 256 MXU contraction granularity
    # only when the extra zero-padding traffic is cheap (<= 12.5% of K).
    K_pad = _round_up(K, 128)
    if K_pad % 256 != 0 and (_round_up(K, 256) - K) * 8 <= K:
        K_pad = _round_up(K, 256)

    # --- E padding: lane-dense (unmasked) output stores.
    E_pad = _round_up(E, 128)

    M8 = _round_up(M, 8)

    # --- Weight residency: keep the full (K_pad, E_pad) weight + bias resident
    # (single buffer, memory_space=VMEM) whenever it fits alongside the
    # double-buffered patch/output tiles at a minimally useful TM.
    w_full_bytes = K_pad * E_pad * w_it + E_pad * 4
    tm_probe = min(M8, 256)
    resident = (w_full_bytes
                + 2 * tm_probe * K_pad * p_it
                + 2 * tm_probe * E_pad * o_it
                + 2 * _MIB) <= budget

    if resident:
        TN = E_pad
        n_n = 1
        w_tile_bytes = w_full_bytes                       # single copy
    else:
        # Tile E.  Never degenerate: pad E_pad up to a multiple of the chosen
        # TN (cdiv-style) instead of requiring exact divisibility.
        hi = min(2048, E_pad)
        hi -= hi % 128
        best_tn, best_waste = 128, None
        for cand in range(hi, 127, -128):
            waste = _round_up(E_pad, cand) - E_pad
            if best_waste is None or waste < best_waste:
                best_tn, best_waste = cand, waste
        TN = best_tn
        E_pad = _round_up(E_pad, TN)
        n_n = E_pad // TN
        w_tile_bytes = 2 * (K_pad * TN * w_it + TN * 4)   # streamed, double-buffered

    def tile_bytes(tm_):
        return (2 * tm_ * K_pad * p_it      # double-buffered patch tile
                + 2 * tm_ * TN * o_it       # double-buffered output tile
                + w_tile_bytes)

    # --- TM: largest sublane-aligned tile that fits the VMEM budget and does
    # not overshoot M by more than ~6% (avoids wasted MXU/DMA work and keeps
    # the final row slice cheap / a no-op).
    tm_cap = max(8, min(tm_max, M8))
    tm_cap -= tm_cap % 8
    while tm_cap > 8 and tile_bytes(tm_cap) > budget:
        tm_cap -= 8
    TM = 8
    for cand in range(tm_cap, 7, -8):
        if (_round_up(M8, cand) - M8) * 16 <= M8:
            TM = cand
            break

    # --- Megacore: guarantee >= 2 grid tiles so both TensorCores get work on
    # dual-core parts (v7x).  Harmless (one extra ~0.35us step) elsewhere.
    if n_n * (_round_up(M8, TM) // TM) == 1 and M8 >= 16:
        TM = max(8, (M8 // 16) * 8)

    M_pad = _round_up(M8, TM)
    n_m = M_pad // TM

    # --- Zero padding is exact: padded rows/cols contribute 0 to the f32 acc
    # and are sliced off below.
    if M_pad != M or K_pad != K:
        patches = jnp.pad(patches, ((0, M_pad - M), (0, K_pad - K)))
    if K_pad != K or E_pad != E:
        weight = jnp.pad(weight, ((0, K_pad - K), (0, E_pad - E)))
    bias2d = jnp.pad(bias.astype(jnp.float32), (0, E_pad - E)).reshape(1, E_pad)

    vmem_limit = int(min(budget, max(tile_bytes(TM) + 4 * _MIB, 16 * _MIB)))

    cost = pl.CostEstimate(
        flops=2 * M_pad * K_pad * E_pad,
        transcendentals=0,
        bytes_accessed=(M_pad * K_pad * p_it + K_pad * E_pad * w_it
                        + E_pad * 4 + M_pad * E_pad * o_it),
    )

    if resident:
        grid = (n_m,)
        in_specs = [
            pl.BlockSpec((TM, K_pad), lambda i: (i, 0)),          # streamed patches
            pl.BlockSpec(memory_space=pltpu.MemorySpace.VMEM),    # resident weight
            pl.BlockSpec(memory_space=pltpu.MemorySpace.VMEM),    # resident bias
        ]
        out_specs = pl.BlockSpec((TM, E_pad), lambda i: (i, 0))
        dims = ("parallel",)
    else:
        # Outer axis over E tiles, inner over M tiles: the weight block index
        # is constant along the inner axis, so its VMEM copy is reused across
        # the whole patch stream of each E tile.
        grid = (n_n, n_m)
        in_specs = [
            pl.BlockSpec((TM, K_pad), lambda j, i: (i, 0)),
            pl.BlockSpec((K_pad, TN), lambda j, i: (0, j)),
            pl.BlockSpec((1, TN), lambda j, i: (0, j)),
        ]
        out_specs = pl.BlockSpec((TM, TN), lambda j, i: (i, j))
        dims = ("parallel", "parallel")

    out = pl.pallas_call(
        _patch_embed_kernel,
        out_shape=jax.ShapeDtypeStruct((M_pad, E_pad), out_dtype),
        grid_spec=pltpu.PrefetchScalarGridSpec(
            num_scalar_prefetch=0,
            grid=grid,
            in_specs=in_specs,
            out_specs=out_specs,
        ),
        compiler_params=pltpu.CompilerParams(
            dimension_semantics=dims,
            vmem_limit_bytes=vmem_limit,
        ),
        cost_estimate=cost,
    )(patches, weight, bias2d)

    if M_pad != M or E_pad != E:
        out = out[:M, :E]
    return out


# ----------------------------------------------------------------------------
# PatchEmbed forward (wrapper)
# ----------------------------------------------------------------------------
def patch_embed_forward(x, conv_w, conv_b, patch_size, tubelet_size, *,
                        compute_dtype=jnp.bfloat16, out_dtype=None, tm_max=None):
    """x: (B, C, T, H, W); conv_w: (E, C, tub, p, p); conv_b: (E,).

    Returns (B, N, E) with N = (T//tub) * (H//p) * (W//p), patch order
    t' (outer), h', w' (inner) -- identical to Conv3d + flatten(2).transpose(1,2).
    `out_dtype=None` keeps x.dtype; pass jnp.bfloat16 for memory-bound configs.
    """
    B, C, T, H, W = x.shape
    E = conv_w.shape[0]
    p, tub = patch_size, tubelet_size
    Tp, Hp, Wp = T // tub, H // p, W // p
    N = Tp * Hp * Wp
    K = C * tub * p * p
    if out_dtype is None:
        out_dtype = x.dtype

    # Patch extraction (== the stride==kernel Conv3d window gather).  One bf16
    # patch matrix is materialized in HBM on purpose (review option (a)): the
    # cast halves the copied bytes, and a clean contiguous re-read beats either
    # a non-fusing transpose or a pathologically strided fused gather.
    # TODO(synk): in-kernel gather streaming NCTHW blocks (lane axis = W).
    xc = x.astype(compute_dtype)
    xp = xc.reshape(B, C, Tp, tub, Hp, p, Wp, p)
    xp = xp.transpose(0, 2, 4, 6, 1, 3, 5, 7)        # (B, Tp, Hp, Wp, C, tub, p, p)
    patches = xp.reshape(B * N, K)

    # Conv3d weight (E, C, tub, p, p) -> matmul weight (K, E); tiny, foldable.
    w_mat = conv_w.reshape(E, K).T.astype(compute_dtype)

    out = _patch_embed_matmul(patches, w_mat, conv_b,
                              out_dtype=out_dtype, tm_max=tm_max)
    # norm_layer=None -> nn.Identity: nothing more to apply.
    return out.reshape(B, N, E)


# ----------------------------------------------------------------------------
# Pure-JAX reference (correctness check)
# ----------------------------------------------------------------------------
def patch_embed_reference(x, conv_w, conv_b, patch_size, tubelet_size):
    y = jax.lax.conv_general_dilated(
        x, conv_w,
        window_strides=(tubelet_size, patch_size, patch_size),
        padding="VALID",
        dimension_numbers=("NCTHW", "OITHW", "NCTHW"),
    )
    y = y + conv_b.reshape(1, -1, 1, 1, 1)
    B, E = y.shape[0], y.shape[1]
    return y.reshape(B, E, -1).transpose(0, 2, 1)     # (B, N, E)


if __name__ == "__main__":
    # Small shapes consistent with the module:
    #   batch=2, in_chans=4, num_frames=2, img_size=16, patch_size=8,
    #   tubelet_size=1, embed_dim=32  ->  grid (2, 2, 2), num_patches=8
    B, C, T, H, W = 2, 4, 2, 16, 16
    patch_size = 8
    tubelet_size = 1
    embed_dim = 32

    key = jax.random.PRNGKey(0)
    kx, kw, kb = jax.random.split(key, 3)
    x = jax.random.normal(kx, (B, C, T, H, W), dtype=jnp.float32)
    conv_w = 0.02 * jax.random.normal(
        kw, (embed_dim, C, tubelet_size, patch_size, patch_size), dtype=jnp.float32)
    conv_b = 0.01 * jax.random.normal(kb, (embed_dim,), dtype=jnp.float32)

    fwd = jax.jit(functools.partial(
        patch_embed_forward, patch_size=patch_size, tubelet_size=tubelet_size))
    out = jax.block_until_ready(fwd(x, conv_w, conv_b))

    ref = jax.block_until_ready(
        patch_embed_reference(x, conv_w, conv_b, patch_size, tubelet_size))

    N = (T // tubelet_size) * (H // patch_size) * (W // patch_size)
    assert out.shape == (B, N, embed_dim), out.shape
    # bf16 operands with f32 accumulation -> loosened tolerance vs f32 reference.
    max_err = jnp.max(jnp.abs(out - ref))
    assert jnp.allclose(out, ref, atol=2e-2, rtol=2e-2), f"mismatch, max err {max_err}"
    print("KERNEL_OK")
</pallas_src>

<mosaic_0001>
module attributes {stable_mosaic.version = 11 : i64} {
  func.func @_patch_embed_kernel(%arg0: i32, %arg1: memref<8x256xbf16, #tpu.memory_space<vmem>>, %arg2: memref<256x128xbf16, #tpu.memory_space<vmem>>, %arg3: memref<1x128xf32, #tpu.memory_space<vmem>>, %arg4: memref<8x128xf32, #tpu.memory_space<vmem>>) attributes {dimension_semantics = [#tpu.dimension_semantics<parallel>], iteration_bounds = array<i64: 2>, scalar_prefetch = 0 : i64, scratch_operands = 0 : i64, tpu.core_type = #tpu.core_type<tc>, window_params = [{transform_indices = @transform_0, window_bounds = array<i64: 8, 256>}, {pipeline_mode = #tpu.pipeline_mode<synchronous>, transform_indices = @transform_1, window_bounds = array<i64: 256, 128>}, {pipeline_mode = #tpu.pipeline_mode<synchronous>, transform_indices = @transform_2, window_bounds = array<i64: 1, 128>}, {transform_indices = @transform_3, window_bounds = array<i64: 8, 128>}]} {
    %c0 = arith.constant 0 : index
    %c0_0 = arith.constant 0 : index
    %0 = vector.load %arg1[%c0, %c0_0] : memref<8x256xbf16, #tpu.memory_space<vmem>>, vector<8x256xbf16>
    %c0_1 = arith.constant 0 : index
    %c0_2 = arith.constant 0 : index
    %1 = vector.load %arg2[%c0_1, %c0_2] : memref<256x128xbf16, #tpu.memory_space<vmem>>, vector<256x128xbf16>
    %cst = arith.constant dense<0.000000e+00> : vector<8x128xf32>
    %2 = tpu.matmul %0, %1, %cst {dimension_numbers = #tpu.dot_dimension_numbers<[1], [0], [0], [1], [0, 0, 1, 1], [], []>} : vector<8x256xbf16>, vector<256x128xbf16>, vector<8x128xf32> -> vector<8x128xf32>
    %c0_3 = arith.constant 0 : index
    %c0_4 = arith.constant 0 : index
    %3 = vector.load %arg3[%c0_3, %c0_4] : memref<1x128xf32, #tpu.memory_space<vmem>>, vector<1x128xf32>
    %4 = vector.broadcast %3 : vector<1x128xf32> to vector<8x128xf32>
    %5 = arith.addf %2, %4 : vector<8x128xf32>
    %c0_5 = arith.constant 0 : index
    %c0_6 = arith.constant 0 : index
    %6 = vector.load %arg4[%c0_5, %c0_6] : memref<8x128xf32, #tpu.memory_space<vmem>>, vector<8x128xf32>
    tpu.vector_store %arg4[%c0_5, %c0_6], %5 {strides = array<i32>} : memref<8x128xf32, #tpu.memory_space<vmem>>, vector<8x128xf32>,
    return
  }
  func.func @transform_0(%arg0: i32) -> (i32, i32) {
    %c0_i32 = arith.constant 0 : i32
    %c0_i32_0 = arith.constant 0 : i32
    return %arg0, %c0_i32 : i32, i32
  }
  func.func @transform_1(%arg0: i32) -> (i32, i32) {
    %c0_i32 = arith.constant 0 : i32
    %c0_i32_0 = arith.constant 0 : i32
    %c0_i32_1 = arith.constant 0 : i32
    return %c0_i32, %c0_i32_0 : i32, i32
  }
  func.func @transform_2(%arg0: i32) -> (i32, i32) {
    %c0_i32 = arith.constant 0 : i32
    %c0_i32_0 = arith.constant 0 : i32
    %c0_i32_1 = arith.constant 0 : i32
    return %c0_i32, %c0_i32_0 : i32, i32
  }
  func.func @transform_3(%arg0: i32) -> (i32, i32) {
    %c0_i32 = arith.constant 0 : i32
    %c0_i32_0 = arith.constant 0 : i32
    return %arg0, %c0_i32 : i32, i32
  }
}

</mosaic_0001>

<bundles_post_ra>
// kernel: patch_embed_forward.1
= control target key start
LH: loop header
LB: loop body
LE: loop exit
PB: predicated region body
PF: predicated region fallthrough
CT: control target
= control target key end

     0   :  { %s517_s12 = smov 0   ;;  %s588_s0 = inlined_call_operand.vmem [shape: bf16[16,256], index: 0, kind: input, shape index: {}]   ;;  %s589_s1 = inlined_call_operand.vmem [shape: bf16[256,128], index: 1, kind: input, shape index: {}]   ;;  %s590_s2 = inlined_call_operand.vmem [shape: f32[1,128], index: 2, kind: input, shape index: {}]   ;;  %s591_s3 = inlined_call_operand.vmem [shape: f32[16,128], index: 3, kind: output, shape index: {}]  }
   0x1 LB: > { %s389_s13 = sadd.s32 4294967295, %s495_s12   ;;  %p393_p0 = scmp.ge.s32.totalorder %s495_s12, 1  ;;  %s495_s12 = sphi %s517_s12, %s13_s12  }
   0x2   : > { %p137_p1 = scmp.lt.s32.totalorder %s495_s12, 3 }
   0x4   : > { %p138_p2 = pnand %p393_p0, %p137_p1 }
   0x5   : > { %p160_p3 = scmp.lt.s32.totalorder (!%p138_p2), %s389_s13, 1 }
   0x6   : > { %141 = sbr.rel (%p138_p2) target bundleno = 178 (0xb2), region = 32 }
   0xb   : > { %v471_v0 = vld [vmem:[%s589_s1 + $0x38] sm:$0xff]  ;;  %v470_v2 = vld [vmem:[%s589_s1 + $0x30] sm:$0xff]  ;;  %v469_v4 = vld [vmem:[%s589_s1 + $0x28] sm:$0xff]  ;;  %s593_s13 = smov (!%p160_p3, %s389_s13), 1 }
   0xc   : > { %v479_v1 = vld [vmem:[%s589_s1 + $0x78] sm:$0xff]  ;;  %309 = vmatpush.bf16.msra.mxu0 %v471_v0  ;;  %v478_v3 = vld [vmem:[%s589_s1 + $0x70] sm:$0xff]  ;;  %v477_v5 = vld [vmem:[%s589_s1 + $0x68] sm:$0xff]  ;;  %s463_s7 = sshll.u32 %s593_s13, 3 }
   0xd   : > { %322 = vmatpush.bf16.msra.mxu1 %v479_v1  ;;  %v468_v6 = vld [vmem:[%s589_s1 + $0x20] sm:$0xff]  ;;  %v467_v8 = vld [vmem:[%s589_s1 + $0x18] sm:$0xff]  ;;  %v466_v10 = vld [vmem:[%s589_s1 + $0x10] sm:$0xff]  ;;  %s164_s16 = scalar_lea.vmem %s588_s0, %s463_s7  ;;  %s168_s28 = scalar_lea.vmem %s591_s3, %s463_s7 }
   0xe   : > { %v476_v7 = vld [vmem:[%s589_s1 + $0x60] sm:$0xff]  ;;  %v475_v9 = vld [vmem:[%s589_s1 + $0x58] sm:$0xff]  ;;  %v474_v11 = vld [vmem:[%s589_s1 + $0x50] sm:$0xff] }
   0xf   : > { %v465_v12 = vld [vmem:[%s589_s1 + $0x8] sm:$0xff]  ;;  %v169_v14 = vld [vmem:[%s164_s16] sm:$0xff] }
  0x10   : > { %310 = vmatpush.bf16.msra.mxu0 %v470_v2  ;;  %v473_v13 = vld [vmem:[%s589_s1 + $0x48] sm:$0xff]  ;;  %v207_v15 = vunpack.c.l.b16 %v169_v14  ;;  %v208_v16 = vunpack.c.h.b16 %v169_v14  ;;  %v464_v17 = vld [vmem:[%s589_s1] sm:$0xff] }
  0x11   : > { %323 = vmatpush.bf16.msra.mxu1 %v478_v3  ;;  %v472_v18 = vld [vmem:[%s589_s1 + $0x40] sm:$0xff] }
  0x12   : > { %v209_v19 = vpack.c.b16 %v207_v15, %v207_v15  ;;  %v210_v20 = vpack.c.b16 %v208_v16, %v208_v16  ;;  %v488_v21 = vld [vmem:[%s590_s2] ss:$0 sm:$0xff] }
  0x14   : > { %311 = vmatpush.bf16.msra.mxu0 %v469_v4 }
  0x15   : > { %324 = vmatpush.bf16.msra.mxu1 %v477_v5 }
  0x18   : > { %312 = vmatpush.bf16.msra.mxu0 %v468_v6 }
  0x19   : > { %325 = vmatpush.bf16.msra.mxu1 %v476_v7 }
  0x1c   : > { %313 = vmatpush.bf16.msra.mxu0 %v467_v8 }
  0x1d   : > { %326 = vmatpush.bf16.msra.mxu1 %v475_v9 }
  0x20   : > { %314 = vmatpush.bf16.msra.mxu0 %v466_v10 }
  0x21   : > { %327 = vmatpush.bf16.msra.mxu1 %v474_v11 }
  0x24   : > { %315 = vmatpush.bf16.msra.mxu0 %v465_v12 }
  0x25   : > { %328 = vmatpush.bf16.msra.mxu1 %v473_v13 }
  0x28   : > { %316 = vmatpush.bf16.msra.mxu0 %v464_v17 }
  0x29   : > { %329 = vmatpush.bf16.msra.mxu1 %v472_v18 }
  0x2b   : > { %317 = vmatmul.bf16.vlgmr.msra.gmra.mxu0 %v209_v19 }
  0x2c   : > { %330 = vmatmul.bf16.vlgmr.msra.gmra.mxu1 %v210_v20 }
  0xa8   : > { %v318_v22 = vpop.f32.mrf.mxu0 }
  0xa9   : > { %v331_v23 = vpop.f32.mrf.mxu1  ;;  %v319_v24 = vadd.f32 %v488_v21, %v318_v22 }
  0xab   : > { %v332_v25 = vadd.f32 %v331_v23, %v319_v24 }
  0xad   : > { %335 = vst [vmem:[%s168_s28] sm:$0xff] %v332_v25 }
  0xb0   : > { %v320_v26 = vpop.f32.mrf.mxu0 }
  0xb1   : > { %v333_v27 = vpop.f32.mrf.mxu1 }
  0xb2 PF: > { %s13_s12 = sadd.s32 1, %s495_s12  }
  0xb3   : > { %p10_p4 = scmp.ge.s32.totalorder %s13_s12, 4  }
  0xb5   :  { %12 = sbr.rel (!%p10_p4) target bundleno = 1 (0x1), region = 62 }

</bundles_post_ra>
